<compile_context>
chip_gen: v7x
topology: tpu7x:2x2x1
jax: 0.10.0
libtpu: 0.0.40
codegen_flags: <defaults>
</compile_context>

<pallas_src>
import functools

import jax
import jax.numpy as jnp
from jax import lax
from jax.experimental import pallas as pl
from jax.experimental.pallas import tpu as pltpu

GAMMA = 1.5
ALPHA = 0.25

_LANES = 128
_CHUNK_ROWS = 512            # 512x128 f32 = 256 KiB per live temporary in the chunk loop
_MAX_ROW_TILE = 8192         # (8192,128) f32 = 4 MiB/input block; x2 inputs x2 buffers = 16 MiB
_VMEM_LIMIT = 32 * 1024 * 1024


def _round_up(x, m):
    return ((x + m - 1) // m) * m


def _cdiv(a, b):
    return -(-a // b)


def _choose_tiling(rows):
    """Pick (row_tile, chunk_rows); row_tile is always a multiple of chunk_rows."""
    if rows <= _CHUNK_ROWS:
        tile = _round_up(rows, 8)
        return tile, tile
    if rows >= 2 * _MAX_ROW_TILE:
        return _MAX_ROW_TILE, _CHUNK_ROWS
    # Mid-size: aim for >=2 blocks so the 'parallel' grid axis can be split
    # across both v7x TensorCores, while keeping the block chunk-aligned.
    tile = min(_MAX_ROW_TILE, _round_up(_cdiv(rows, 2), _CHUNK_ROWS))
    return tile, _CHUNK_ROWS


def _chunk_slice(ref, c, chunk_rows):
    """Slice a (chunk_rows, 128) window at chunk index c (static or traced)."""
    if isinstance(c, int):
        start = c * chunk_rows
    else:
        start = pl.multiple_of(c * chunk_rows, 8)
    return ref[pl.ds(start, chunk_rows), :]


def _chunk_partial(x_raw, t_raw, gamma, alpha):
    """QFocal loss for one (chunk_rows, 128) chunk, partial-summed to (8, 128)."""
    x = x_raw.astype(jnp.float32)
    t = t_raw.astype(jnp.float32)

    # One exp(-|x|) shared by the BCE log term and the sigmoid.
    e = jnp.exp(-jnp.abs(x))

    # BCEWithLogitsLoss(reduction='none'), numerically stable form.
    bce = jnp.maximum(x, 0.0) - x * t + jnp.log1p(e)

    # sigmoid(x) from the same exp: 1/(1+e) for x>=0, e/(1+e) for x<0.
    # (Exact divide; pl.reciprocal(approx=True) would cost ~1e-4 rel. accuracy.)
    inv = 1.0 / (1.0 + e)
    pred_prob = jnp.where(x >= 0.0, inv, e * inv)

    # alpha_factor = t*a + (1-t)*(1-a) == (1-a) + (2a-1)*t  (constants fold at trace time)
    alpha_factor = (1.0 - alpha) + (2.0 * alpha - 1.0) * t

    z = jnp.abs(t - pred_prob)
    if gamma == 1.5:
        modulating_factor = z * jnp.sqrt(z)          # avoids exp(g*log z)
    elif gamma == 2.0:
        modulating_factor = z * z
    elif gamma == 1.0:
        modulating_factor = z
    elif gamma == 0.0:
        modulating_factor = jnp.ones_like(z)
    else:
        # Generic path lowers via exp(g*log z); guard z == 0 (log(0) = -inf).
        modulating_factor = jnp.where(z > 0.0, jnp.maximum(z, 1e-30) ** gamma, 0.0)

    loss = bce * alpha_factor * modulating_factor

    # Partial-sum this chunk down to one vreg (pure VPU adds); the single
    # cross-lane/sublane reduce happens once in the wrapper.
    return jnp.sum(loss.reshape(-1, 8, _LANES), axis=0)


def _qfocal_block_kernel(pred_ref, true_ref, out_ref, *,
                         chunk_rows, n_chunks, last_block, valid_last,
                         gamma, alpha):
    row_tile = n_chunks * chunk_rows
    zero = jnp.zeros((8, _LANES), jnp.float32)

    def full_body(c, acc):
        x = _chunk_slice(pred_ref, c, chunk_rows)
        t = _chunk_slice(true_ref, c, chunk_rows)
        return acc + _chunk_partial(x, t, gamma, alpha)

    def run_full():
        if n_chunks == 1:
            out_ref[...] = full_body(0, zero)
        else:
            out_ref[...] = lax.fori_loop(0, n_chunks, full_body, zero, unroll=False)

    if valid_last == row_tile:
        # Every grid block is full: one uniform, mask-free path.
        run_full()
        return

    # The last grid block is ragged: rows >= valid_last were never DMA'd (their
    # VMEM contents are undefined), so force their inputs to the zero-loss point
    # (pred=0, true=0.5) before any math touches them.  Chunks that are entirely
    # past the valid range are skipped (loop bound is static).
    n_chunks_last = _cdiv(valid_last, chunk_rows)
    row_iota = lax.broadcasted_iota(jnp.int32, (chunk_rows, 1), 0)

    def masked_body(c, acc):
        x = _chunk_slice(pred_ref, c, chunk_rows)
        t = _chunk_slice(true_ref, c, chunk_rows)
        valid = row_iota < (valid_last - c * chunk_rows)
        x = jnp.where(valid, x, jnp.zeros_like(x))
        t = jnp.where(valid, t, jnp.full_like(t, 0.5))
        return acc + _chunk_partial(x, t, gamma, alpha)

    def run_masked():
        if n_chunks_last == 1:
            out_ref[...] = masked_body(0, zero)
        else:
            out_ref[...] = lax.fori_loop(0, n_chunks_last, masked_body, zero,
                                         unroll=False)

    if last_block == 0:
        # Single (partial) block: only the masked path is ever taken.
        run_masked()
        return

    is_last = pl.program_id(0) == last_block

    @pl.when(jnp.logical_not(is_last))
    def _():
        run_full()

    @pl.when(is_last)
    def _():
        run_masked()


def qfocal_loss(pred, true, *, gamma=GAMMA, alpha=ALPHA, reduction="mean"):
    """QFocalLoss forward. pred/true are logits/targets of identical shape (NCHW ok)."""
    assert pred.shape == true.shape
    n_elem = pred.size

    # Integer / bool hard labels: bf16 is exact for 0/1 and halves the `true`
    # HBM stream; the f32 upcast happens in-kernel.
    if not jnp.issubdtype(true.dtype, jnp.floating):
        true = true.astype(jnp.bfloat16)

    rows = _cdiv(n_elem, _LANES)
    pad = rows * _LANES - n_elem

    pred_f = pred.reshape(-1)
    true_f = true.reshape(-1)
    if pad:
        # Only hit when n_elem is not a multiple of 128 (pads < 128 elements).
        # Pad pred with 0 and true with 0.5: sigmoid(0)=0.5 so |t-p|=0 and the
        # padding contributes exactly zero to the sum (no correction term).
        # TODO(synk): this still materializes one padded copy of each input;
        # avoiding it entirely would need a manual flat-DMA path.
        pred_f = jnp.pad(pred_f, (0, pad))
        true_f = jnp.pad(true_f, (0, pad), constant_values=0.5)
    pred2 = pred_f.reshape(rows, _LANES)
    true2 = true_f.reshape(rows, _LANES)

    row_tile, chunk_rows = _choose_tiling(rows)
    num_blocks = _cdiv(rows, row_tile)
    valid_last = rows - (num_blocks - 1) * row_tile   # static; == row_tile iff aligned

    kernel = functools.partial(
        _qfocal_block_kernel,
        chunk_rows=chunk_rows,
        n_chunks=row_tile // chunk_rows,
        last_block=num_blocks - 1,
        valid_last=valid_last,
        gamma=gamma,
        alpha=alpha,
    )

    out_rows = num_blocks * 8
    in_bytes = (pred2.size * pred2.dtype.itemsize
                + true2.size * true2.dtype.itemsize)
    cost = pl.CostEstimate(
        flops=18 * n_elem,
        transcendentals=4 * n_elem,
        bytes_accessed=in_bytes + out_rows * _LANES * 4,
    )

    partials = pl.pallas_call(
        kernel,
        out_shape=jax.ShapeDtypeStruct((out_rows, _LANES), jnp.float32),
        grid_spec=pltpu.PrefetchScalarGridSpec(
            num_scalar_prefetch=0,
            grid=(num_blocks,),
            in_specs=[
                pl.BlockSpec((row_tile, _LANES), lambda i: (i, 0)),
                pl.BlockSpec((row_tile, _LANES), lambda i: (i, 0)),
            ],
            out_specs=pl.BlockSpec((8, _LANES), lambda i: (i, 0)),
        ),
        compiler_params=pltpu.CompilerParams(
            dimension_semantics=("parallel",),
            vmem_limit_bytes=_VMEM_LIMIT,
        ),
        cost_estimate=cost,
    )(pred2, true2)

    total = jnp.sum(partials)

    if reduction == "mean":
        return total / n_elem
    elif reduction == "sum":
        return total
    else:
        # TODO(synk): reduction='none' would need the per-element loss tensor;
        # only the reduced 'mean'/'sum' paths are implemented here.
        raise NotImplementedError("reduction='none' not wired to the reduced kernel")


def _qfocal_ref(pred, true, gamma=GAMMA, alpha=ALPHA):
    x = pred.astype(jnp.float32)
    t = true.astype(jnp.float32)
    bce = jnp.maximum(x, 0.0) - x * t + jnp.log1p(jnp.exp(-jnp.abs(x)))
    p = jax.nn.sigmoid(x)
    af = t * alpha + (1.0 - t) * (1.0 - alpha)
    mf = jnp.abs(t - p) ** gamma
    return jnp.mean(bce * af * mf)


if __name__ == "__main__":
    key = jax.random.PRNGKey(0)
    k1, k2, k3 = jax.random.split(key, 3)

    # 1) Small NCHW-style logits/targets (e.g. objectness/quality maps in YOLO).
    shape = (2, 4, 16, 16)
    pred = jax.random.normal(k1, shape, dtype=jnp.float32) * 2.0
    true = jax.random.uniform(k2, shape, dtype=jnp.float32)   # quality targets in [0,1]
    out = jax.block_until_ready(qfocal_loss(pred, true, reduction="mean"))
    ref = _qfocal_ref(pred, true)
    assert jnp.allclose(out, ref, rtol=1e-5, atol=1e-6), (out, ref)

    # 2) Non-128-multiple size: exercises the tiny wrapper pad + in-kernel row mask.
    shape2 = (3, 5, 7, 11)   # 1155 elements
    p2 = jax.random.normal(k1, shape2, dtype=jnp.float32)
    t2 = jax.random.uniform(k2, shape2, dtype=jnp.float32)
    out2 = jax.block_until_ready(qfocal_loss(p2, t2))
    assert jnp.allclose(out2, _qfocal_ref(p2, t2), rtol=1e-5, atol=1e-6), (out2,)

    # 3) Multi-block grid with a ragged last block + integer hard labels (bf16 path):
    #    exercises the pl.when full/masked dispatch and the chunked fori_loop.
    shape3 = (2, 3, 160, 160)   # 153600 elements -> 1200 rows -> 2 blocks of 1024
    p3 = jax.random.normal(k3, shape3, dtype=jnp.float32)
    t3 = (jax.random.uniform(k2, shape3) > 0.5).astype(jnp.int32)
    out3 = jax.block_until_ready(qfocal_loss(p3, t3, reduction="mean"))
    ref3 = _qfocal_ref(p3, t3)
    assert jnp.allclose(out3, ref3, rtol=1e-4, atol=1e-6), (out3, ref3)

    print("KERNEL_OK")
</pallas_src>

<mosaic_0001>
module attributes {stable_mosaic.version = 11 : i64} {
  func.func @_qfocal_block_kernel(%arg0: i32, %arg1: memref<16x128xf32, #tpu.memory_space<vmem>>, %arg2: memref<16x128xf32, #tpu.memory_space<vmem>>, %arg3: memref<8x128xf32, #tpu.memory_space<vmem>>) attributes {dimension_semantics = [#tpu.dimension_semantics<parallel>], iteration_bounds = array<i64: 1>, scalar_prefetch = 0 : i64, scratch_operands = 0 : i64, tpu.core_type = #tpu.core_type<tc>, window_params = [{transform_indices = @transform_0, window_bounds = array<i64: 16, 128>}, {transform_indices = @transform_1, window_bounds = array<i64: 16, 128>}, {transform_indices = @transform_2, window_bounds = array<i64: 8, 128>}]} {
    %cst = arith.constant 0.000000e+00 : f32
    %0 = vector.broadcast %cst : f32 to vector<8x128xf32>
    %c0 = arith.constant 0 : index
    %c0_0 = arith.constant 0 : index
    %1 = vector.load %arg1[%c0, %c0_0] : memref<16x128xf32, #tpu.memory_space<vmem>>, vector<16x128xf32>
    %c0_1 = arith.constant 0 : index
    %c0_2 = arith.constant 0 : index
    %2 = vector.load %arg2[%c0_1, %c0_2] : memref<16x128xf32, #tpu.memory_space<vmem>>, vector<16x128xf32>
    %3 = math.absf %1 : vector<16x128xf32>
    %cst_3 = arith.constant 0.000000e+00 : f32
    %4 = vector.broadcast %cst_3 : f32 to vector<16x128xf32>
    %5 = arith.subf %4, %3 : vector<16x128xf32>
    %6 = math.exp %5 : vector<16x128xf32>
    %cst_4 = arith.constant 0.000000e+00 : f32
    %7 = vector.broadcast %cst_4 : f32 to vector<16x128xf32>
    %8 = arith.maximumf %1, %7 : vector<16x128xf32>
    %9 = arith.mulf %1, %2 : vector<16x128xf32>
    %10 = arith.subf %8, %9 : vector<16x128xf32>
    %11 = math.log1p %6 : vector<16x128xf32>
    %12 = arith.addf %10, %11 : vector<16x128xf32>
    %cst_5 = arith.constant 1.000000e+00 : f32
    %13 = vector.broadcast %cst_5 : f32 to vector<16x128xf32>
    %14 = arith.addf %13, %6 : vector<16x128xf32>
    %cst_6 = arith.constant 1.000000e+00 : f32
    %15 = vector.broadcast %cst_6 : f32 to vector<16x128xf32>
    %16 = arith.divf %15, %14 : vector<16x128xf32>
    %cst_7 = arith.constant 0.000000e+00 : f32
    %17 = vector.broadcast %cst_7 : f32 to vector<16x128xf32>
    %18 = arith.cmpf oge, %1, %17 : vector<16x128xf32>
    %19 = arith.mulf %6, %16 : vector<16x128xf32>
    %20 = arith.select %18, %16, %19 : vector<16x128xi1>, vector<16x128xf32>
    %cst_8 = arith.constant -5.000000e-01 : f32
    %21 = vector.broadcast %cst_8 : f32 to vector<16x128xf32>
    %22 = arith.mulf %21, %2 : vector<16x128xf32>
    %cst_9 = arith.constant 7.500000e-01 : f32
    %23 = vector.broadcast %cst_9 : f32 to vector<16x128xf32>
    %24 = arith.addf %23, %22 : vector<16x128xf32>
    %25 = arith.subf %2, %20 : vector<16x128xf32>
    %26 = math.absf %25 : vector<16x128xf32>
    %27 = math.sqrt %26 : vector<16x128xf32>
    %28 = arith.mulf %26, %27 : vector<16x128xf32>
    %29 = arith.mulf %12, %24 : vector<16x128xf32>
    %30 = arith.mulf %29, %28 : vector<16x128xf32>
    %31 = vector.shape_cast %30 : vector<16x128xf32> to vector<2x8x128xf32>
    %cst_10 = arith.constant dense<0.000000e+00> : vector<8x128xf32>
    %32 = vector.multi_reduction <add>, %31, %cst_10 [0] : vector<2x8x128xf32> to vector<8x128xf32>
    %33 = arith.addf %0, %32 : vector<8x128xf32>
    %c0_11 = arith.constant 0 : index
    %c0_12 = arith.constant 0 : index
    %34 = vector.load %arg3[%c0_11, %c0_12] : memref<8x128xf32, #tpu.memory_space<vmem>>, vector<8x128xf32>
    tpu.vector_store %arg3[%c0_11, %c0_12], %33 {strides = array<i32>} : memref<8x128xf32, #tpu.memory_space<vmem>>, vector<8x128xf32>,
    return
  }
  func.func @transform_0(%arg0: i32) -> (i32, i32) {
    %c0_i32 = arith.constant 0 : i32
    %c0_i32_0 = arith.constant 0 : i32
    return %arg0, %c0_i32 : i32, i32
  }
  func.func @transform_1(%arg0: i32) -> (i32, i32) {
    %c0_i32 = arith.constant 0 : i32
    %c0_i32_0 = arith.constant 0 : i32
    return %arg0, %c0_i32 : i32, i32
  }
  func.func @transform_2(%arg0: i32) -> (i32, i32) {
    %c0_i32 = arith.constant 0 : i32
    %c0_i32_0 = arith.constant 0 : i32
    return %arg0, %c0_i32 : i32, i32
  }
}

</mosaic_0001>

<bundles_post_ra>
// kernel: tpu_custom_call.1
= control target key start
LH: loop header
LB: loop body
LE: loop exit
PB: predicated region body
PF: predicated region fallthrough
CT: control target
= control target key end

     0   :  { %7 = vsyncpa [#allocation3], 0  ;;  %s286_s0 = inlined_call_operand.hbm [shape: f32[16,128], index: 0, kind: input, shape index: {}]   ;;  %s287_s1 = inlined_call_operand.hbm [shape: f32[16,128], index: 1, kind: input, shape index: {}]   ;;  %s288_s2 = inlined_call_operand.hbm [shape: f32[8,128], index: 2, kind: output, shape index: {}]  }
   0x1   :  { %8 = vsyncpa [#allocation6], 0 }
   0x2   :  { %9 = vsyncpa [#allocation4], 0  ;;  %s230_s9 = smov [#allocation2]   ;;  %s158_s13 = scalar_lea.hbm %s286_s0, 256 }
   0x3   :  { %s15_s10 = sshll.u32 %s230_s9, 4  ;;  %p159_p0 = scmp.ne.s32.totalorder %s286_s0, %s158_s13  ;;  %s16_s10 = int_to_ptr.vmem [resolvable:$true] %s15_s10 }
   0x4   :  { %p162_p1 = scmp.lt.u32.totalorder %s158_s13, %s286_s0 }
   0x6   :  { %p164_p2 = pnand %p162_p1, %p159_p0 }
   0x8   :  { %167 = shalt.err (!%p164_p2)
}
   0x9   :  { %s168_s18 = scalar_lea.vmem %s16_s10, 256  ;;  %p173_p4 = scmp.lt.s32.totalorder %s16_s10, %s16_s10 }
   0xa   :  { %p169_p3 = scmp.ne.s32.totalorder %s16_s10, %s168_s18  ;;  %p174_p5 = scmp.lt.s32.totalorder %s168_s18, %s168_s18 }
   0xc   :  { %p175_p6 = por %p174_p5, %p173_p4 }
   0xe   :  { %p176_p7 = pnand %p175_p6, %p169_p3 }
  0x10   :  { %179 = shalt.err (!%p176_p7)
}
  0x11   :  { %s231_s19 = smov 128   ;;  %s232_s20 = smov 8  }
  0x12   :  { %21 = dma.hbm_to_vmem [thread:$0]  %s286_s0, 256, %s16_s10, [#allocation3], %s231_s19, %s231_s19, %s232_s20  }
  0x13   :  { %s233_s23 = smov [#allocation5]   ;;  %s180_s27 = scalar_lea.hbm %s287_s1, 256 }
  0x14   :  { %s27_s24 = sshll.u32 %s233_s23, 4  ;;  %p181_p8 = scmp.ne.s32.totalorder %s287_s1, %s180_s27  ;;  %s28_s24 = int_to_ptr.vmem [resolvable:$true] %s27_s24 }
  0x15   :  { %p184_p9 = scmp.lt.u32.totalorder %s180_s27, %s287_s1 }
  0x17   :  { %p186_p10 = pnand %p184_p9, %p181_p8 }
  0x19   :  { %189 = shalt.err (!%p186_p10)
}
  0x1a   :  { %s190_s4 = scalar_lea.vmem %s28_s24, 256  ;;  %p195_p12 = scmp.lt.s32.totalorder %s28_s24, %s28_s24 }
  0x1b   :  { %p191_p11 = scmp.ne.s32.totalorder %s28_s24, %s190_s4  ;;  %p196_p13 = scmp.lt.s32.totalorder %s190_s4, %s190_s4 }
  0x1d   :  { %p197_p0 = por %p196_p13, %p195_p12 }
  0x1f   :  { %p198_p1 = pnand %p197_p0, %p191_p11 }
  0x21   :  { %201 = shalt.err (!%p198_p1)
}
  0x22   :  { %33 = dma.hbm_to_vmem [thread:$0]  %s287_s1, 256, %s28_s24, [#allocation6], %s231_s19, %s231_s19, %s232_s20  }
  0x23   :  { %224 = dma.done.wait [#allocation3], 256  }
  0x24   :  { %225 = vsyncadd [#allocation3], 4294967040 }
  0x25   :  { %226 = dma.done.wait [#allocation6], 256  }
  0x26   :  { %227 = vsyncadd [#allocation6], 4294967040  ;;  %v40_v0 = vld [vmem:[#allocation2] sm:$0xff]  ;;  %v41_v1 = vld [vmem:[#allocation2 + $0x8] sm:$0xff]  ;;  %s234_s1 = smov [#allocation7]  }
  0x27   :  { %v44_v2 = vand.u32 2147483647, %v40_v0  ;;  %v45_v3 = vand.u32 2147483647, %v41_v1  ;;  %vm84_vm0 = vcmp.ge.f32.partialorder %v40_v0, 0.0  ;;  %v42_v14 = vld [vmem:[#allocation5] sm:$0xff] }
  0x28   :  { %vm85_vm1 = vcmp.ge.f32.partialorder %v41_v1, 0.0  ;;  %v43_v16 = vld [vmem:[#allocation5 + $0x8] sm:$0xff]  ;;  %v52_v32 = vmax.f32 %v40_v0, 0.0  ;;  %v54_v33 = vmul.f32 %v42_v14, %v40_v0  ;;  %v53_v34 = vmax.f32 %v41_v1, 0.0  ;;  %s127_s6 = sshll.u32 %s234_s1, 4  ;;  %s128_s6 = int_to_ptr.vmem [resolvable:$true] %s127_s6 }
  0x29   :  { %v46_v4 = vsub.f32 0.0, %v44_v2  ;;  %v47_v5 = vsub.f32 0.0, %v45_v3  ;;  %v55_v35 = vmul.f32 %v43_v16, %v41_v1  ;;  %v90_v41 = vmul.f32 -0.5, %v42_v14  ;;  %s202_s7 = scalar_lea.vmem %s128_s6, 128  ;;  %p207_p3 = scmp.lt.s32.totalorder %s128_s6, %s128_s6 }
  0x2a   :  { %v56_v40 = vsub.f32 %v52_v32, %v54_v33  ;;  %v91_v44 = vmul.f32 -0.5, %v43_v16  ;;  %p203_p2 = scmp.ne.s32.totalorder %s128_s6, %s202_s7  ;;  %p208_p4 = scmp.lt.s32.totalorder %s202_s7, %s202_s7 }
  0x2b   :  { %v48_v6 = vmul.f32 1.442695, %v46_v4  ;;  %v50_v7 = vmul.f32 1.442695, %v47_v5  ;;  %v57_v42 = vsub.f32 %v53_v34, %v55_v35  ;;  %v92_v47 = vadd.f32 0.75, %v90_v41 }
  0x2c   :  { %v93_v50 = vadd.f32 0.75, %v91_v44  ;;  %p209_p5 = por %p208_p4, %p207_p3 }
  0x2d   :  { %142 = vpow2.f32 %v48_v6 }
  0x2e   :  { %144 = vpow2.f32 %v50_v7  ;;  %p210_p6 = pnand %p209_p5, %p203_p2 }
  0x37   :  { %v143_v8 = vpop.eup %142 }
  0x38   :  { %v145_v9 = vpop.eup %144  ;;  %v58_v10 = vadd.f32 1.0, %v143_v8  ;;  %v61_v17 = vmul.f32 -0.5, %v143_v8  ;;  %v64_v27 = vand.u32 2147483647, %v143_v8 }
  0x39   :  { %v67_v11 = vadd.f32 1.0, %v145_v9  ;;  %v70_v19 = vmul.f32 -0.5, %v145_v9  ;;  %v73_v31 = vand.u32 2147483647, %v145_v9 }
  0x3a   :  { %146 = vrcp.f32 %v58_v10  ;;  %v62_v24 = vadd.f32 1.0, %v61_v17  ;;  %vm65_vm2 = vcmp.lt.f32.partialorder %v64_v27, 0.0004427343 }
  0x3b   :  { %148 = vrcp.f32 %v67_v11  ;;  %v71_v28 = vadd.f32 1.0, %v70_v19  ;;  %vm74_vm3 = vcmp.lt.f32.partialorder %v73_v31, 0.0004427343 }
  0x3c   :  { %150 = vlog2.f32 %v58_v10  ;;  %v63_v37 = vmul.f32 %v143_v8, %v62_v24 }
  0x3d   :  { %152 = vlog2.f32 %v67_v11  ;;  %v72_v39 = vmul.f32 %v145_v9, %v71_v28 }
  0x44   :  { %v147_v12 = vpop.eup %146 }
  0x45   :  { %v149_v13 = vpop.eup %148  ;;  %v86_v15 = vmul.f32 %v147_v12, %v143_v8 }
  0x46   :  { %v87_v18 = vmul.f32 %v149_v13, %v145_v9  ;;  %v151_v26 = vpop.eup %150 }
  0x47   :  { %v88_v20 = vsel %vm84_vm0, %v147_v12, %v86_v15  ;;  %v153_v30 = vpop.eup %152  ;;  %v60_v36 = vmul.f32 0.6931472, %v151_v26 }
  0x48   :  { %v89_v21 = vsel %vm85_vm1, %v149_v13, %v87_v18  ;;  %v94_v22 = vsub.f32 %v42_v14, %v88_v20  ;;  %v69_v38 = vmul.f32 0.6931472, %v153_v30 }
  0x49   :  { %v95_v23 = vsub.f32 %v43_v16, %v89_v21  ;;  %v66_v43 = vsel %vm65_vm2, %v63_v37, %v60_v36 }
  0x4a   :  { %v96_v25 = vand.u32 2147483647, %v94_v22  ;;  %v75_v45 = vsel %vm74_vm3, %v72_v39, %v69_v38  ;;  %v76_v46 = vadd.f32 %v66_v43, %v56_v40 }
  0x4b   :  { %v97_v29 = vand.u32 2147483647, %v95_v23  ;;  %v77_v49 = vadd.f32 %v75_v45, %v57_v42 }
  0x4c   :  { %154 = vrsqrt.f32 %v96_v25  ;;  %vm100_vm4 = vcmp.eq.f32.partialorder %v96_v25, inf  ;;  %v103_v51 = vand.u32 2147483648, %v96_v25  ;;  %vm102_vm5 = vcmp.eq.f32.partialorder %v96_v25, 0.0 }
  0x4d   :  { %156 = vrsqrt.f32 %v97_v29  ;;  %vm107_vm6 = vcmp.eq.f32.partialorder %v97_v29, inf  ;;  %v110_v54 = vand.u32 2147483648, %v97_v29  ;;  %vm109_vm7 = vcmp.eq.f32.partialorder %v97_v29, 0.0 }
  0x4e   :  { %v114_v57 = vmul.f32 %v92_v47, %v76_v46  ;;  %v115_v60 = vmul.f32 %v93_v50, %v77_v49 }
  0x56   :  { %v155_v48 = vpop.eup %154 }
  0x57   :  { %v157_v52 = vpop.eup %156  ;;  %v99_v53 = vmul.f32 %v155_v48, %v96_v25 }
  0x58   :  { %v106_v55 = vmul.f32 %v157_v52, %v97_v29 }
  0x59   :  { %v101_v56 = vsel %vm100_vm4, %v96_v25, %v99_v53 }
  0x5a   :  { %v104_v58 = vsel %vm102_vm5, %v103_v51, %v101_v56  ;;  %v108_v59 = vsel %vm107_vm6, %v97_v29, %v106_v55 }
  0x5b   :  { %v111_v61 = vsel %vm109_vm7, %v110_v54, %v108_v59  ;;  %v112_v62 = vmul.f32 %v104_v58, %v96_v25 }
  0x5c   :  { %v113_v63 = vmul.f32 %v111_v61, %v97_v29 }
  0x5d   :  { %v116_v0 = vmul.f32 %v114_v57, %v112_v62 }
  0x5e   :  { %v117_v1 = vmul.f32 %v115_v60, %v113_v63 }
  0x60   :  { %v118_v2 = vadd.f32 %v117_v1, %v116_v0 }
  0x62   :  { %120 = vst [vmem:[#allocation7] sm:$0xff] %v118_v2 }
  0x63   :  { %213 = shalt.err (!%p210_p6)
}
  0x64   :  { %s214_s10 = scalar_lea.hbm %s288_s2, 128 }
  0x65   :  { %p215_p7 = scmp.ne.s32.totalorder %s288_s2, %s214_s10  ;;  %p218_p8 = scmp.lt.u32.totalorder %s214_s10, %s288_s2 }
  0x67   :  { %p220_p9 = pnand %p218_p8, %p215_p7 }
  0x69   :  { %223 = shalt.err (!%p220_p9)
}
  0x6a   :  { %130 = dma.vmem_to_hbm [thread:$0]  %s128_s6, 128, %s288_s2, [#allocation4]  }
  0x6b   :  { %228 = dma.done.wait [#allocation4], 128  }
  0x6c   :  { %229 = vsyncadd [#allocation4], 4294967168 }
  0x6d   :  { %134 = vsyncpa [#allocation3], 1 }
  0x6e   :  { %135 = vsyncpa [#allocation6], 1 }
  0x6f   :  { %136 = vsyncpa [#allocation4], 1 }

</bundles_post_ra>
